<compile_context>
chip_gen: v5e
topology: v5e:2x2
jax: 0.10.0
libtpu: 0.0.40
codegen_flags: <defaults>
</compile_context>

<pallas_src>
import functools
import math

import jax
import jax.numpy as jnp
from jax.experimental import pallas as pl
from jax.experimental.pallas import tpu as pltpu


NEG_FILL = -1e9  # matches torch masked_fill_(attn_mask, -1000000000.0)


# ------------------------------ helpers --------------------------------------

def _tile_for(n, max_tile=256):
    """Pick an MXU/layout-friendly tile and (possibly padded) extent for dim n.

    Small dims (<= max_tile) are used as a single full-dim block (no padding);
    larger dims are padded to a multiple of 128 and tiled at 256 or 128.
    """
    if n <= max_tile:
        return n, n
    n_p = ((n + 127) // 128) * 128
    tile = 256 if n_p % 256 == 0 else 128
    return tile, n_p


def _choose_heads_per_block(nh, d, dv, tq, tk, per_head_mask_bytes, out_bytes,
                            budget_bytes=10 * 1024 * 1024):
    """Largest head-block that keeps the output slab lane-dense and fits a
    conservative per-grid-step VMEM budget (inputs double-buffered, f32 scratch,
    m/l stats counted at their lane-padded size)."""
    def step_bytes(h):
        qkv = 2 * 2 * h * (tq * d + tk * d + tk * dv)      # bf16 inputs, x2 bufs
        msk = 2 * h * per_head_mask_bytes                  # int8 mask, x2 bufs
        out = 2 * out_bytes * h * tq * dv                  # output block, x2 bufs
        scr = 4 * h * (tq * dv + 2 * tq * 128)             # f32 acc + padded m/l
        return qkv + msk + out + scr

    valid = [h for h in range(1, nh + 1)
             if nh % h == 0 and ((h * dv) % 128 == 0 or h == nh)]
    fitting = [h for h in valid if step_bytes(h) <= budget_bytes]
    return max(fitting) if fitting else min(valid)


def _bf16_eup_ok():
    """bf16 exp is a win on v6e/v7x (bf16 EUP); keep f32 softmax math on v5e/v4."""
    try:
        kind = jax.devices()[0].device_kind.lower()
    except Exception:
        return False
    return any(tag in kind for tag in ("v6", "v7", "tpu7"))


# ------------------------------ kernel ----------------------------------------

def _sdpa_kernel(skip_ref, q_ref, k_ref, v_ref, mask_ref, o_ref,
                 m_sc, l_sc, acc_sc, *, hb, dv, mask_shared, exp_bf16):
    # Blocks: q (1, hb, tq, D), k/v (1, hb, tk, D/Dv), mask (tq, tk) or
    # (1, hb, tq, tk) int8, output (1, tq, hb*Dv).  Grid = (B, head-blk, q-tile,
    # k-tile); the k-tile (reduction) axis is innermost / "arbitrary".
    b, hi = pl.program_id(0), pl.program_id(1)
    qi, ki = pl.program_id(2), pl.program_id(3)
    nhb, nq, nk = pl.num_programs(1), pl.num_programs(2), pl.num_programs(3)

    @pl.when(ki == 0)
    def _init():
        m_sc[...] = jnp.full_like(m_sc, -jnp.inf)
        l_sc[...] = jnp.zeros_like(l_sc)
        acc_sc[...] = jnp.zeros_like(acc_sc)

    # Skip fully-masked k-tiles (e.g. ~half the tiles for a causal mask): no
    # matmuls, no exp, no select.  The wrapper never marks a tile skippable if
    # any query row in it is fully masked across ALL keys, so the -1e9 fill
    # (-> uniform softmax) behaviour of the PyTorch module is preserved.
    flat = ((b * nhb + hi) * nq + qi) * nk + ki

    @pl.when(skip_ref[flat] == 0)
    def _update():
        q = q_ref[0]                           # (hb, tq, D)   bf16, pre-scaled
        k = k_ref[0]                           # (hb, tk, D)   bf16
        v = v_ref[0]                           # (hb, tk, Dv)  bf16
        mask = mask_ref[...] if mask_shared else mask_ref[0]

        # Batched-over-heads QK^T on the MXU, f32 accumulation.  (Note: the
        # contraction here is D, so small head dims underuse MXU rows; the PV
        # matmul below contracts over tk and is the efficient one.)
        s = jnp.einsum("hqd,hkd->hqk", q, k, preferred_element_type=jnp.float32)
        s = jnp.where(mask != 0, NEG_FILL, s)  # masked_fill_(attn_mask, -1e9)

        # Online (flash) softmax update; running stats stay f32.
        m_prev = m_sc[...]
        m_new = jnp.maximum(m_prev, s.max(axis=-1, keepdims=True))
        alpha = jnp.exp(m_prev - m_new)
        if exp_bf16:
            # bf16 EUP path (v6e/v7x): ~2x exp throughput; l stays f32.
            p = jnp.exp((s - m_new).astype(jnp.bfloat16))
            l_add = p.astype(jnp.float32).sum(axis=-1, keepdims=True)
            pv = jnp.einsum("hqk,hkd->hqd", p, v,
                            preferred_element_type=jnp.float32)
        else:
            p = jnp.exp(s - m_new)
            l_add = p.sum(axis=-1, keepdims=True)
            pv = jnp.einsum("hqk,hkd->hqd", p.astype(v.dtype), v,
                            preferred_element_type=jnp.float32)
        l_sc[...] = alpha * l_sc[...] + l_add
        acc_sc[...] = alpha * acc_sc[...] + pv
        m_sc[...] = m_new

    @pl.when(ki == nk - 1)
    def _finalize():
        l = l_sc[...]
        # approx reciprocal adds ~1e-3 rel. error; use approx=False for exact
        # parity with the PyTorch module if required.
        inv_l = pl.reciprocal(jnp.where(l == 0.0, 1.0, l), approx=True)
        out = acc_sc[...] * inv_l              # (hb, tq, Dv) f32
        if dv % 128 == 0:
            # each per-head store is already a full-lane (unmasked) store
            for h in range(hb):
                o_ref[0, :, h * dv:(h + 1) * dv] = out[h].astype(o_ref.dtype)
        else:
            # relayout once and do a single lane-dense store (avoids Dv-wide
            # masked vst.msk partial stores)
            slab = jnp.concatenate([out[h] for h in range(hb)], axis=-1)
            o_ref[0] = slab.astype(o_ref.dtype)


# ------------------------------ wrapper ----------------------------------------

def scaled_dot_product_attention(q, k, v, attn_mask, *,
                                 compute_dtype=jnp.bfloat16,
                                 out_dtype=None,
                                 return_slab=False,
                                 exp_bf16=None):
    """Q,K,V: (B, NH, T, D); attn_mask: bool, (Tq,Tk) / (1,1,Tq,Tk) / (B,NH,Tq,Tk).

    Returns (B, NH, Tq, Dv) in `out_dtype` (default: q.dtype, matching PyTorch),
    or the lane-dense (B, Tq, NH*Dv) slab if return_slab=True.
    """
    B, NH, Tq, D = q.shape
    Tk = k.shape[2]
    Dv = v.shape[-1]
    out_dtype = q.dtype if out_dtype is None else out_dtype
    exp_bf16 = _bf16_eup_ok() if exp_bf16 is None else exp_bf16
    scale = 1.0 / math.sqrt(D)                 # PyTorch: / np.sqrt(Q.size(-1))

    tq, Tq_p = _tile_for(Tq)
    tk, Tk_p = _tile_for(Tk)
    nq, nk = Tq_p // tq, Tk_p // tk
    dq, dk = Tq_p - Tq, Tk_p - Tk

    # ---- mask normalization: shared (Tq,Tk) vs per-slot (B,NH,Tq,Tk) ----------
    if attn_mask.ndim == 2:
        mask2d, mask_full = attn_mask, None
    elif (attn_mask.ndim == 4 and attn_mask.shape[0] == 1
          and attn_mask.shape[1] == 1):
        mask2d, mask_full = attn_mask[0, 0], None
    else:
        mask2d = None
        mask_full = jnp.broadcast_to(attn_mask, (B, NH, Tq, Tk))
    mask_shared = mask2d is not None

    # ---- fold the softmax scale into Q, cast MXU inputs to bf16, pad ----------
    qc = (q * scale).astype(compute_dtype)
    kc = k.astype(compute_dtype)
    vc = v.astype(compute_dtype)
    if dq:
        qc = jnp.pad(qc, ((0, 0), (0, 0), (0, dq), (0, 0)))
    if dk:
        kc = jnp.pad(kc, ((0, 0), (0, 0), (0, dk), (0, 0)))
        vc = jnp.pad(vc, ((0, 0), (0, 0), (0, dk), (0, 0)))

    if mask_shared:
        m = mask2d
        if dk:  # padded keys are masked out
            m = jnp.pad(m, ((0, 0), (0, dk)), constant_values=True)
        if dq:  # padded query rows are dropped; keep them non-degenerate
            m = jnp.pad(m, ((0, dq), (0, 0)), constant_values=False)
        mask_arr = m.astype(jnp.int8)
    else:
        m = mask_full
        if dk:
            m = jnp.pad(m, ((0, 0), (0, 0), (0, 0), (0, dk)), constant_values=True)
        if dq:
            m = jnp.pad(m, ((0, 0), (0, 0), (0, dq), (0, 0)), constant_values=False)
        mask_arr = m.astype(jnp.int8)

    # ---- head blocking sized for the scoped-VMEM budget -----------------------
    out_bytes = jnp.dtype(out_dtype).itemsize
    per_head_mask_bytes = 0 if mask_shared else tq * tk
    hb = _choose_heads_per_block(NH, D, Dv, tq, tk, per_head_mask_bytes, out_bytes)
    nhb = NH // hb

    # ---- skip table: tile fully masked AND no fully-masked row in the block ---
    mb = mask_arr != 0
    if mask_shared:
        tile_all = mb.reshape(nq, tq, nk, tk).all(axis=(1, 3))           # (nq, nk)
        row_full = mb.all(axis=-1).reshape(nq, tq).any(axis=1)           # (nq,)
        skip = tile_all & ~row_full[:, None]
        skip = jnp.broadcast_to(skip[None, None], (B, nhb, nq, nk))
    else:
        tile_all = mb.reshape(B, nhb, hb, nq, tq, nk, tk).all(axis=(2, 4, 6))
        row_full = mb.all(axis=-1).reshape(B, nhb, hb, nq, tq).any(axis=(2, 4))
        skip = tile_all & ~row_full[..., None]
    skip_flat = skip.reshape(-1).astype(jnp.int32)

    # ---- BlockSpecs (index_maps receive the scalar-prefetch ref last) ---------
    if mask_shared:
        mask_spec = pl.BlockSpec((tq, tk), lambda b, h, i, j, s_: (i, j))
    else:
        mask_spec = pl.BlockSpec((1, hb, tq, tk),
                                 lambda b, h, i, j, s_: (b, h, i, j))

    kern = functools.partial(_sdpa_kernel, hb=hb, dv=Dv,
                             mask_shared=mask_shared, exp_bf16=exp_bf16)

    out_slab = pl.pallas_call(
        kern,
        out_shape=jax.ShapeDtypeStruct((B, Tq_p, NH * Dv), out_dtype),
        grid_spec=pltpu.PrefetchScalarGridSpec(
            num_scalar_prefetch=1,
            grid=(B, nhb, nq, nk),
            in_specs=[
                pl.BlockSpec((1, hb, tq, D), lambda b, h, i, j, s_: (b, h, i, 0)),
                # K/V are re-streamed per q-tile; bump these to
                # pipeline_mode=pl.Buffered(3) if profiling shows DMA exposed.
                pl.BlockSpec((1, hb, tk, D), lambda b, h, i, j, s_: (b, h, j, 0)),
                pl.BlockSpec((1, hb, tk, Dv), lambda b, h, i, j, s_: (b, h, j, 0)),
                mask_spec,
            ],
            out_specs=pl.BlockSpec((1, tq, hb * Dv),
                                   lambda b, h, i, j, s_: (b, i, h)),
            scratch_shapes=[
                pltpu.VMEM((hb, tq, 1), jnp.float32),    # running max m
                pltpu.VMEM((hb, tq, 1), jnp.float32),    # running sum l
                pltpu.VMEM((hb, tq, Dv), jnp.float32),   # output accumulator
            ]),
        compiler_params=pltpu.CompilerParams(
            dimension_semantics=("parallel", "parallel", "parallel", "arbitrary"),
            vmem_limit_bytes=32 * 1024 * 1024),
    )(skip_flat, qc, kc, vc, mask_arr)

    if dq:
        out_slab = out_slab[:, :Tq, :]
    if return_slab:
        return out_slab                                   # (B, Tq, NH*Dv)
    # Layout plumbing only; use return_slab=True to feed an o-proj directly.
    return out_slab.reshape(B, Tq, NH, Dv).transpose(0, 2, 1, 3)


# ------------------------------ main -------------------------------------------

if __name__ == "__main__":
    B, NH, Tq, Tk, D = 2, 4, 8, 8, 32

    root = jax.random.PRNGKey(0)
    kq, kk, kv, km = jax.random.split(root, 4)
    Q = jax.random.normal(kq, (B, NH, Tq, D), jnp.float32)
    K = jax.random.normal(kk, (B, NH, Tk, D), jnp.float32)
    V = jax.random.normal(kv, (B, NH, Tk, D), jnp.float32)

    scale = 1.0 / math.sqrt(D)

    def reference(q, k, v, mask_b):
        # Pure-JAX reference mirroring the kernel's input quantization (scale
        # folded into Q, bf16 MXU inputs) to validate masking + online softmax.
        qr = (q * scale).astype(jnp.bfloat16).astype(jnp.float32)
        kr = k.astype(jnp.bfloat16).astype(jnp.float32)
        vr = v.astype(jnp.bfloat16).astype(jnp.float32)
        s = jnp.einsum("bhqd,bhkd->bhqk", qr, kr)
        s = jnp.where(mask_b, NEG_FILL, s)
        return jnp.einsum("bhqk,bhkd->bhqd", jax.nn.softmax(s, axis=-1), vr)

    sdpa = jax.jit(scaled_dot_product_attention)

    # 1) Shared causal mask: streamed once as (Tq, Tk), broadcast via index_map,
    #    with fully-masked k-tiles skipped.
    causal = jnp.triu(jnp.ones((Tq, Tk), jnp.bool_), k=1)
    out1 = sdpa(Q, K, V, causal)
    jax.block_until_ready(out1)
    assert out1.shape == (B, NH, Tq, D) and out1.dtype == Q.dtype
    ref1 = reference(Q, K, V, jnp.broadcast_to(causal, (B, NH, Tq, Tk)))
    err1 = float(jnp.max(jnp.abs(out1 - ref1)))
    assert err1 < 5e-2, f"causal-mask max abs error {err1}"

    # 2) Per-batch/head boolean mask (exercises the per-slot mask path).
    full_mask = jax.random.uniform(km, (B, NH, Tq, Tk)) < 0.25
    out2 = sdpa(Q, K, V, full_mask)
    jax.block_until_ready(out2)
    ref2 = reference(Q, K, V, full_mask)
    err2 = float(jnp.max(jnp.abs(out2 - ref2)))
    assert err2 < 5e-2, f"full-mask max abs error {err2}"

    print("KERNEL_OK")
</pallas_src>

<mosaic_0001>
module attributes {stable_mosaic.version = 11 : i64} {
  func.func @_sdpa_kernel(%arg0: i32, %arg1: i32, %arg2: i32, %arg3: i32, %arg4: memref<2xi32, #tpu.memory_space<smem>>, %arg5: memref<1x4x8x32xbf16, #tpu.memory_space<vmem>>, %arg6: memref<1x4x8x32xbf16, #tpu.memory_space<vmem>>, %arg7: memref<1x4x8x32xbf16, #tpu.memory_space<vmem>>, %arg8: memref<8x8xi8, #tpu.memory_space<vmem>>, %arg9: memref<1x8x128xf32, #tpu.memory_space<vmem>>, %arg10: memref<4x8x1xf32, #tpu.memory_space<vmem>>, %arg11: memref<4x8x1xf32, #tpu.memory_space<vmem>>, %arg12: memref<4x8x32xf32, #tpu.memory_space<vmem>>) attributes {dimension_semantics = [#tpu.dimension_semantics<parallel>, #tpu.dimension_semantics<parallel>, #tpu.dimension_semantics<parallel>, #tpu.dimension_semantics<arbitrary>], iteration_bounds = array<i64: 2, 1, 1, 1>, scalar_prefetch = 1 : i64, scratch_operands = 3 : i64, tpu.core_type = #tpu.core_type<tc>, window_params = [{transform_indices = @transform_0, window_bounds = array<i64: 1, 4, 8, 32>}, {transform_indices = @transform_1, window_bounds = array<i64: 1, 4, 8, 32>}, {transform_indices = @transform_2, window_bounds = array<i64: 1, 4, 8, 32>}, {transform_indices = @transform_3, window_bounds = array<i64: 8, 8>}, {transform_indices = @transform_4, window_bounds = array<i64: 1, 8, 128>}]} {
    %c0_i32 = arith.constant 0 : i32
    %0 = arith.cmpi eq, %arg3, %c0_i32 : i32
    %1 = arith.extui %0 : i1 to i32
    %c0_i32_0 = arith.constant 0 : i32
    %2 = arith.cmpi ne, %1, %c0_i32_0 : i32
    scf.if %2 {
      %cst = arith.constant 0xFF800000 : f32
      %17 = vector.broadcast %cst : f32 to vector<4x8x1xf32>
      %c0 = arith.constant 0 : index
      %c0_7 = arith.constant 0 : index
      %c0_8 = arith.constant 0 : index
      %18 = vector.load %arg10[%c0, %c0_7, %c0_8] : memref<4x8x1xf32, #tpu.memory_space<vmem>>, vector<4x8x1xf32>
      tpu.vector_store %arg10[%c0, %c0_7, %c0_8], %17 {strides = array<i32>} : memref<4x8x1xf32, #tpu.memory_space<vmem>>, vector<4x8x1xf32>,
      %cst_9 = arith.constant 0.000000e+00 : f32
      %19 = vector.broadcast %cst_9 : f32 to vector<4x8x1xf32>
      %c0_10 = arith.constant 0 : index
      %c0_11 = arith.constant 0 : index
      %c0_12 = arith.constant 0 : index
      %20 = vector.load %arg11[%c0_10, %c0_11, %c0_12] : memref<4x8x1xf32, #tpu.memory_space<vmem>>, vector<4x8x1xf32>
      tpu.vector_store %arg11[%c0_10, %c0_11, %c0_12], %19 {strides = array<i32>} : memref<4x8x1xf32, #tpu.memory_space<vmem>>, vector<4x8x1xf32>,
      %cst_13 = arith.constant 0.000000e+00 : f32
      %21 = vector.broadcast %cst_13 : f32 to vector<4x8x32xf32>
      %c0_14 = arith.constant 0 : index
      %c0_15 = arith.constant 0 : index
      %c0_16 = arith.constant 0 : index
      %22 = vector.load %arg12[%c0_14, %c0_15, %c0_16] : memref<4x8x32xf32, #tpu.memory_space<vmem>>, vector<4x8x32xf32>
      tpu.vector_store %arg12[%c0_14, %c0_15, %c0_16], %21 {strides = array<i32>} : memref<4x8x32xf32, #tpu.memory_space<vmem>>, vector<4x8x32xf32>,
    } else {
    }
    %c1_i32 = arith.constant 1 : i32
    %3 = arith.muli %arg0, %c1_i32 : i32
    %4 = arith.addi %3, %arg1 : i32
    %c1_i32_1 = arith.constant 1 : i32
    %5 = arith.muli %4, %c1_i32_1 : i32
    %6 = arith.addi %5, %arg2 : i32
    %c1_i32_2 = arith.constant 1 : i32
    %7 = arith.muli %6, %c1_i32_2 : i32
    %8 = arith.addi %7, %arg3 : i32
    %9 = arith.index_cast %8 : i32 to index
    %10 = memref.load %arg4[%9] : memref<2xi32, #tpu.memory_space<smem>>
    %c0_i32_3 = arith.constant 0 : i32
    %11 = arith.cmpi eq, %10, %c0_i32_3 : i32
    %12 = arith.extui %11 : i1 to i32
    %c0_i32_4 = arith.constant 0 : i32
    %13 = arith.cmpi ne, %12, %c0_i32_4 : i32
    scf.if %13 {
      %c0 = arith.constant 0 : index
      %c0_7 = arith.constant 0 : index
      %c0_8 = arith.constant 0 : index
      %c0_9 = arith.constant 0 : index
      %17 = vector.load %arg5[%c0, %c0_7, %c0_8, %c0_9] : memref<1x4x8x32xbf16, #tpu.memory_space<vmem>>, vector<1x4x8x32xbf16>
      %18 = vector.shape_cast %17 : vector<1x4x8x32xbf16> to vector<4x8x32xbf16>
      %c0_10 = arith.constant 0 : index
      %c0_11 = arith.constant 0 : index
      %c0_12 = arith.constant 0 : index
      %c0_13 = arith.constant 0 : index
      %19 = vector.load %arg6[%c0_10, %c0_11, %c0_12, %c0_13] : memref<1x4x8x32xbf16, #tpu.memory_space<vmem>>, vector<1x4x8x32xbf16>
      %20 = vector.shape_cast %19 : vector<1x4x8x32xbf16> to vector<4x8x32xbf16>
      %c0_14 = arith.constant 0 : index
      %c0_15 = arith.constant 0 : index
      %c0_16 = arith.constant 0 : index
      %c0_17 = arith.constant 0 : index
      %21 = vector.load %arg7[%c0_14, %c0_15, %c0_16, %c0_17] : memref<1x4x8x32xbf16, #tpu.memory_space<vmem>>, vector<1x4x8x32xbf16>
      %22 = vector.shape_cast %21 : vector<1x4x8x32xbf16> to vector<4x8x32xbf16>
      %c0_18 = arith.constant 0 : index
      %c0_19 = arith.constant 0 : index
      %23 = vector.load %arg8[%c0_18, %c0_19] : memref<8x8xi8, #tpu.memory_space<vmem>>, vector<8x8xi8>
      "tpu.trace_start"() <{level = 10 : i32, message = "hqd,hkd->hqk"}> : () -> ()
      %cst = arith.constant dense<0.000000e+00> : vector<4x8x8xf32>
      %24 = tpu.matmul %18, %20, %cst {dimension_numbers = #tpu.dot_dimension_numbers<[2], [2], [1], [1], [0, 0, 0, 1, 1, 1], [0], [0]>} : vector<4x8x32xbf16>, vector<4x8x32xbf16>, vector<4x8x8xf32> -> vector<4x8x8xf32>
      %c0_i8 = arith.constant 0 : i8
      "tpu.trace_stop"() : () -> ()
      %25 = vector.broadcast %c0_i8 : i8 to vector<8x8xi8>
      %26 = arith.cmpi ne, %23, %25 : vector<8x8xi8>
      %cst_20 = arith.constant -1.000000e+09 : f32
      %27 = vector.shape_cast %26 : vector<8x8xi1> to vector<1x8x8xi1>
      %28 = vector.broadcast %27 : vector<1x8x8xi1> to vector<4x8x8xi1>
      %29 = vector.broadcast %cst_20 : f32 to vector<4x8x8xf32>
      %30 = arith.select %28, %29, %24 : vector<4x8x8xi1>, vector<4x8x8xf32>
      %c0_21 = arith.constant 0 : index
      %c0_22 = arith.constant 0 : index
      %c0_23 = arith.constant 0 : index
      %31 = vector.load %arg10[%c0_21, %c0_22, %c0_23] : memref<4x8x1xf32, #tpu.memory_space<vmem>>, vector<4x8x1xf32>
      %cst_24 = arith.constant dense<0xFF800000> : vector<4x8xf32>
      %32 = vector.multi_reduction <maximumf>, %30, %cst_24 [2] : vector<4x8x8xf32> to vector<4x8xf32>
      %33 = vector.shape_cast %32 : vector<4x8xf32> to vector<4x8x1xf32>
      %34 = arith.maximumf %31, %33 : vector<4x8x1xf32>
      %35 = arith.subf %31, %34 : vector<4x8x1xf32>
      %36 = math.exp %35 : vector<4x8x1xf32>
      %37 = vector.broadcast %34 : vector<4x8x1xf32> to vector<4x8x8xf32>
      %38 = arith.subf %30, %37 : vector<4x8x8xf32>
      %39 = math.exp %38 : vector<4x8x8xf32>
      %cst_25 = arith.constant dense<0.000000e+00> : vector<4x8xf32>
      %40 = vector.multi_reduction <add>, %39, %cst_25 [2] : vector<4x8x8xf32> to vector<4x8xf32>
      %41 = vector.shape_cast %40 : vector<4x8xf32> to vector<4x8x1xf32>
      %42 = arith.truncf %39 : vector<4x8x8xf32> to vector<4x8x8xbf16>
      "tpu.trace_start"() <{level = 10 : i32, message = "hqk,hkd->hqd"}> : () -> ()
      %cst_26 = arith.constant dense<0.000000e+00> : vector<4x8x32xf32>
      %43 = tpu.matmul %42, %22, %cst_26 {dimension_numbers = #tpu.dot_dimension_numbers<[2], [1], [1], [2], [0, 0, 0, 1, 1, 2], [0], [0]>} : vector<4x8x8xbf16>, vector<4x8x32xbf16>, vector<4x8x32xf32> -> vector<4x8x32xf32>
      "tpu.trace_stop"() : () -> ()
      %c0_27 = arith.constant 0 : index
      %c0_28 = arith.constant 0 : index
      %c0_29 = arith.constant 0 : index
      %44 = vector.load %arg11[%c0_27, %c0_28, %c0_29] : memref<4x8x1xf32, #tpu.memory_space<vmem>>, vector<4x8x1xf32>
      %45 = arith.mulf %36, %44 : vector<4x8x1xf32>
      %46 = arith.addf %45, %41 : vector<4x8x1xf32>
      %c0_30 = arith.constant 0 : index
      %c0_31 = arith.constant 0 : index
      %c0_32 = arith.constant 0 : index
      %47 = vector.load %arg11[%c0_30, %c0_31, %c0_32] : memref<4x8x1xf32, #tpu.memory_space<vmem>>, vector<4x8x1xf32>
      tpu.vector_store %arg11[%c0_30, %c0_31, %c0_32], %46 {strides = array<i32>} : memref<4x8x1xf32, #tpu.memory_space<vmem>>, vector<4x8x1xf32>,
      %c0_33 = arith.constant 0 : index
      %c0_34 = arith.constant 0 : index
      %c0_35 = arith.constant 0 : index
      %48 = vector.load %arg12[%c0_33, %c0_34, %c0_35] : memref<4x8x32xf32, #tpu.memory_space<vmem>>, vector<4x8x32xf32>
      %49 = vector.broadcast %36 : vector<4x8x1xf32> to vector<4x8x32xf32>
      %50 = arith.mulf %49, %48 : vector<4x8x32xf32>
      %51 = arith.addf %50, %43 : vector<4x8x32xf32>
      %c0_36 = arith.constant 0 : index
      %c0_37 = arith.constant 0 : index
      %c0_38 = arith.constant 0 : index
      %52 = vector.load %arg12[%c0_36, %c0_37, %c0_38] : memref<4x8x32xf32, #tpu.memory_space<vmem>>, vector<4x8x32xf32>
      tpu.vector_store %arg12[%c0_36, %c0_37, %c0_38], %51 {strides = array<i32>} : memref<4x8x32xf32, #tpu.memory_space<vmem>>, vector<4x8x32xf32>,
      %c0_39 = arith.constant 0 : index
      %c0_40 = arith.constant 0 : index
      %c0_41 = arith.constant 0 : index
      %53 = vector.load %arg10[%c0_39, %c0_40, %c0_41] : memref<4x8x1xf32, #tpu.memory_space<vmem>>, vector<4x8x1xf32>
      tpu.vector_store %arg10[%c0_39, %c0_40, %c0_41], %34 {strides = array<i32>} : memref<4x8x1xf32, #tpu.memory_space<vmem>>, vector<4x8x1xf32>,
    } else {
    }
    %c0_i32_5 = arith.constant 0 : i32
    %14 = arith.cmpi eq, %arg3, %c0_i32_5 : i32
    %15 = arith.extui %14 : i1 to i32
    %c0_i32_6 = arith.constant 0 : i32
    %16 = arith.cmpi ne, %15, %c0_i32_6 : i32
    scf.if %16 {
      %c0 = arith.constant 0 : index
      %c0_7 = arith.constant 0 : index
      %c0_8 = arith.constant 0 : index
      %17 = vector.load %arg11[%c0, %c0_7, %c0_8] : memref<4x8x1xf32, #tpu.memory_space<vmem>>, vector<4x8x1xf32>
      %cst = arith.constant 0.000000e+00 : f32
      %18 = vector.broadcast %cst : f32 to vector<4x8x1xf32>
      %19 = arith.cmpf oeq, %17, %18 : vector<4x8x1xf32>
      %cst_9 = arith.constant 1.000000e+00 : f32
      %20 = vector.broadcast %cst_9 : f32 to vector<4x8x1xf32>
      %21 = arith.select %19, %20, %17 : vector<4x8x1xi1>, vector<4x8x1xf32>
      %22 = tpu.reciprocal %21 {approx = true} : vector<4x8x1xf32> -> vector<4x8x1xf32>
      %c0_10 = arith.constant 0 : index
      %c0_11 = arith.constant 0 : index
      %c0_12 = arith.constant 0 : index
      %23 = vector.load %arg12[%c0_10, %c0_11, %c0_12] : memref<4x8x32xf32, #tpu.memory_space<vmem>>, vector<4x8x32xf32>
      %24 = vector.broadcast %22 : vector<4x8x1xf32> to vector<4x8x32xf32>
      %25 = arith.mulf %23, %24 : vector<4x8x32xf32>
      %26 = vector.extract_strided_slice %25 {offsets = [0, 0, 0], sizes = [1, 8, 32], strides = [1, 1, 1]} : vector<4x8x32xf32> to vector<1x8x32xf32>
      %27 = vector.shape_cast %26 : vector<1x8x32xf32> to vector<8x32xf32>
      %28 = vector.extract_strided_slice %25 {offsets = [1, 0, 0], sizes = [1, 8, 32], strides = [1, 1, 1]} : vector<4x8x32xf32> to vector<1x8x32xf32>
      %29 = vector.shape_cast %28 : vector<1x8x32xf32> to vector<8x32xf32>
      %30 = vector.extract_strided_slice %25 {offsets = [2, 0, 0], sizes = [1, 8, 32], strides = [1, 1, 1]} : vector<4x8x32xf32> to vector<1x8x32xf32>
      %31 = vector.shape_cast %30 : vector<1x8x32xf32> to vector<8x32xf32>
      %32 = vector.extract_strided_slice %25 {offsets = [3, 0, 0], sizes = [1, 8, 32], strides = [1, 1, 1]} : vector<4x8x32xf32> to vector<1x8x32xf32>
      %33 = vector.shape_cast %32 : vector<1x8x32xf32> to vector<8x32xf32>
      %34 = tpu.concatenate %27, %29, %31, %33 in 1 : vector<8x32xf32>, vector<8x32xf32>, vector<8x32xf32>, vector<8x32xf32> -> vector<8x128xf32>
      %c0_13 = arith.constant 0 : index
      %c0_14 = arith.constant 0 : index
      %c0_15 = arith.constant 0 : index
      %35 = vector.load %arg9[%c0_13, %c0_14, %c0_15] : memref<1x8x128xf32, #tpu.memory_space<vmem>>, vector<1x8x128xf32>
      %36 = vector.shape_cast %35 : vector<1x8x128xf32> to vector<8x128xf32>
      %37 = vector.shape_cast %34 : vector<8x128xf32> to vector<1x8x128xf32>
      tpu.vector_store %arg9[%c0_13, %c0_14, %c0_15], %37 {strides = array<i32>} : memref<1x8x128xf32, #tpu.memory_space<vmem>>, vector<1x8x128xf32>,
    } else {
    }
    return
  }
  func.func @transform_0(%arg0: i32, %arg1: i32, %arg2: i32, %arg3: i32, %arg4: memref<2xi32, #tpu.memory_space<smem>>) -> (i32, i32, i32, i32) {
    %c0_i32 = arith.constant 0 : i32
    %c0_i32_0 = arith.constant 0 : i32
    return %arg0, %arg1, %arg2, %c0_i32 : i32, i32, i32, i32
  }
  func.func @transform_1(%arg0: i32, %arg1: i32, %arg2: i32, %arg3: i32, %arg4: memref<2xi32, #tpu.memory_space<smem>>) -> (i32, i32, i32, i32) {
    %c0_i32 = arith.constant 0 : i32
    %c0_i32_0 = arith.constant 0 : i32
    return %arg0, %arg1, %arg3, %c0_i32 : i32, i32, i32, i32
  }
  func.func @transform_2(%arg0: i32, %arg1: i32, %arg2: i32, %arg3: i32, %arg4: memref<2xi32, #tpu.memory_space<smem>>) -> (i32, i32, i32, i32) {
    %c0_i32 = arith.constant 0 : i32
    %c0_i32_0 = arith.constant 0 : i32
    return %arg0, %arg1, %arg3, %c0_i32 : i32, i32, i32, i32
  }
  func.func @transform_3(%arg0: i32, %arg1: i32, %arg2: i32, %arg3: i32, %arg4: memref<2xi32, #tpu.memory_space<smem>>) -> (i32, i32) {
    %c0_i32 = arith.constant 0 : i32
    return %arg2, %arg3 : i32, i32
  }
  func.func @transform_4(%arg0: i32, %arg1: i32, %arg2: i32, %arg3: i32, %arg4: memref<2xi32, #tpu.memory_space<smem>>) -> (i32, i32, i32) {
    %c0_i32 = arith.constant 0 : i32
    return %arg0, %arg2, %arg1 : i32, i32, i32
  }
}

</mosaic_0001>

<bundles_post_ra>
// kernel: scaled_dot_product_attention.1
= control target key start
LH: loop header
LB: loop body
LE: loop exit
PB: predicated region body
PF: predicated region fallthrough
CT: control target
= control target key end

     0   :  { %s1089_s21 = smov [#allocation6]   ;;  %s1268_s0 = inlined_call_operand.vmem [shape: s32[2], index: 0, kind: input, shape index: {}]   ;;  %s1269_s1 = inlined_call_operand.vmem [shape: bf16[2,4,8,32], index: 1, kind: input, shape index: {}]   ;;  %s1270_s2 = inlined_call_operand.vmem [shape: bf16[2,4,8,32], index: 2, kind: input, shape index: {}]   ;;  %s1271_s3 = inlined_call_operand.vmem [shape: bf16[2,4,8,32], index: 3, kind: input, shape index: {}]   ;;  %s1272_s4 = inlined_call_operand.vmem [shape: s8[8,8], index: 4, kind: input, shape index: {}]   ;;  %s1273_s5 = inlined_call_operand.vmem [shape: f32[2,8,128], index: 5, kind: output, shape index: {}]  }
   0x1   :  { %s11_s20 = sshll.u32 %s1268_s0, 4  ;;  %s12_s20 = int_to_ptr.vmem [resolvable:$true] %s11_s20 }
   0x2   :  { %14 = dma.vmem_to_smem %s12_s20, 16, %s1089_s21, [#allocation5] }
   0x3   :  { %1075 = dma.done.wait [#allocation5], 16 }
   0x4   :  { %1076 = vsyncadd [#allocation5], 4294967280 }
   0x5   :  { %17 = sfence }
   0x6   :  { %s1130_s22 = smov 0   ;;  %s1132_s23 = smov 0  }
   0x7   :  { %s1134_s24 = smov 0  }
   0x8 LB: > { %s49_s0 = sadd.s32 1, %s1083_s23  ;;  %p968_p0 = scmp.ge.s32.totalorder %s1087_s24, 1  ;;  %s1087_s24 = sphi %s1134_s24, %s23_s24   ;;  %s1083_s23 = sphi %s1132_s23, %s1277_s23   ;;  %s1079_s22 = sphi %s1130_s22, %s1276_s22  }
   0x9   : > { %p51_p1 = scmp.ge.s32.totalorder %s49_s0, 2  ;;  %p271_p2 = scmp.lt.s32.totalorder %s1087_s24, 3 }
   0xb   : > { %s1279_s0 = smov (%p51_p1, %s49_s0), 0  ;;  %p272_p3 = pnand %p968_p0, %p271_p2 }
   0xc   : > { %p341_p4 = scmp.lt.s32.totalorder (!%p272_p3), %s1079_s22, 1  ;;  %s420_s25 = sld [smem:[#allocation6 + %s1079_s22]] (!%p272_p3) }
   0xd   : > { %275 = sbr.rel (%p272_p3) target bundleno = 802 (0x322), region = 36 }
  0x12   : > { %vm403_vm0 = vcmask 7168   ;;  %v1090_v0 = vmov -inf   ;;  %s1281_s22 = smov (!%p341_p4, %s1079_s22), 1  ;;  %v1091_v1 = vmov 0.0   ;;  %vm412_vm1 = vcmask 261120   ;;  %p976_p5 = scmp.ne.s32.totalorder %s420_s25, 0 }
  0x13   : > { %404 = vst.msk [vmem:[#allocation2] sm:$0xff] %vm403_vm0, %v1090_v0  ;;  %s987_s26 = sshll.u32 %s1281_s22, 4  ;;  %s975_s27 = sshll.u32 %s1281_s22, 3 }
  0x14   : > { %405 = vst.msk [vmem:[#allocation2 + $0x8] sm:$0xff] %vm403_vm0, %v1090_v0  ;;  %s1155_s30 = scalar_lea.vmem %s1269_s1, %s987_s26  ;;  %s364_s8 = scalar_lea.vmem %s1270_s2, %s987_s26 }
  0x15   : > { %406 = vst.msk [vmem:[#allocation2 + $0x10] sm:$0xff] %vm403_vm0, %v1090_v0  ;;  %s1164_s11 = scalar_lea.vmem %s1271_s3, %s987_s26  ;;  %s1169_s14 = scalar_lea.vmem %s1273_s5, %s975_s27 }
  0x16   : > { %407 = vst.msk [vmem:[#allocation2 + $0x18] sm:$0xff] %vm403_vm0, %v1090_v0 }
  0x17   : > { %408 = vst.msk [vmem:[#allocation3] sm:$0xff] %vm403_vm0, %v1091_v1 }
  0x18   : > { %409 = vst.msk [vmem:[#allocation3 + $0x8] sm:$0xff] %vm403_vm0, %v1091_v1 }
  0x19   : > { %410 = vst.msk [vmem:[#allocation3 + $0x10] sm:$0xff] %vm403_vm0, %v1091_v1 }
  0x1a   : > { %411 = vst.msk [vmem:[#allocation3 + $0x18] sm:$0xff] %vm403_vm0, %v1091_v1  ;;  %424 = sbr.rel (%p976_p5) target bundleno = 556 (0x22c), region = 44 }
  0x1b   : > { %413 = vst.msk [vmem:[#allocation4] sm:$0xff] %vm412_vm1, %v1091_v1 }
  0x1c   : > { %414 = vst.msk [vmem:[#allocation4 + $0x8] sm:$0xff] %vm412_vm1, %v1091_v1 }
  0x1d   : > { %415 = vst.msk [vmem:[#allocation4 + $0x10] sm:$0xff] %vm412_vm1, %v1091_v1 }
  0x1e   : > { %416 = vst.msk [vmem:[#allocation4 + $0x18] sm:$0xff] %vm412_vm1, %v1091_v1 }
  0x1f   : > { %v429_v2 = vld [vmem:[%s364_s8] sm:$0xf]  ;;  %v430_v3 = vld [vmem:[%s364_s8 + $0x4] sm:$0xf]  ;;  %v431_v4 = vld [vmem:[%s364_s8 + $0x8] sm:$0xf] }
  0x20   : > { %v443_v5 = vsel %vm412_vm1, %v429_v2, 0  ;;  %v462_v6 = vsel %vm412_vm1, %v430_v3, 0  ;;  %v481_v7 = vsel %vm412_vm1, %v431_v4, 0  ;;  %v432_v8 = vld [vmem:[%s364_s8 + $0xc] sm:$0xf]  ;;  %v1092_v14 = vmov 0  }
  0x21   : > { %452 = vmatpush.bf16.xpose.msra.mxu0 %v443_v5  ;;  %471 = vmatpush.bf16.xpose.msra.mxu1 %v462_v6  ;;  %v500_v9 = vsel %vm412_vm1, %v432_v8, 0  ;;  %v425_v10 = vld [vmem:[%s1155_s30] sm:$0xf]  ;;  %v426_v11 = vld [vmem:[%s1155_s30 + $0x4] sm:$0xf]  ;;  %vm529_vm4 = vcmask 64512  }
  0x22   : > { %490 = vmatpush.bf16.xpose.msra.mxu2 %v481_v7  ;;  %509 = vmatpush.bf16.xpose.msra.mxu3 %v500_v9  ;;  %v427_v12 = vld [vmem:[%s1155_s30 + $0x8] sm:$0xf]  ;;  %v428_v13 = vld [vmem:[%s1155_s30 + $0xc] sm:$0xf]  ;;  %v437_v15 = vld [vmem:[%s1272_s4] sm:$0x3] }
  0x23   : > { %1023 = vset.pattern.permute.xlu0 %v1092_v14  ;;  %1022 = vset.pattern.permute.xlu2 %v1092_v14  ;;  %vm515_vm2 = vnez %v437_v15  ;;  %v525_v35 = vld [vmem:[#allocation2] sm:$0xff]  ;;  %v527_v39 = vld [vmem:[#allocation2 + $0x10] sm:$0xff]  ;;  %v526_v40 = vld [vmem:[#allocation2 + $0x8] sm:$0xff]  ;;  %vm609_vm5 = vcmask 1043456  }
  0x24   : > { %1024 = vset.pattern.permute.xlu1 %v1092_v14  ;;  %v516_v16 = vsel %vm515_vm2, 16843009, %v1092_v14  ;;  %v528_v49 = vld [vmem:[#allocation2 + $0x18] sm:$0xff]  ;;  %v435_v59 = vld [vmem:[%s1164_s11 + $0x8] sm:$0xf] }
  0x25   : > { %v517_v17 = vunpack.c.0.s8 %v516_v16  ;;  %v649_v60 = vsel %vm609_vm5, %v435_v59, 0  ;;  %v436_v61 = vld [vmem:[%s1164_s11 + $0xc] sm:$0xf]  ;;  %v433_v63 = vld [vmem:[%s1164_s11] sm:$0xf] }
  0x26   : > { %v668_v62 = vsel %vm609_vm5, %v436_v61, 0  ;;  %v434_v0 = vld [vmem:[%s1164_s11 + $0x4] sm:$0xf]  ;;  %v611_v1 = vsel %vm609_vm5, %v433_v63, 0  ;;  %v701_v61 = vld [vmem:[#allocation4 + $0x8] sm:$0xff] }
  0x27   : > { %vm1193_vm3 = vcmp.ne.s32.totalorder %v517_v17, 0  ;;  %v630_v2 = vsel %vm609_vm5, %v434_v0, 0 }
  0x28   : > { %977 = vmatmul.msk.bf16.vlgmr.msra.gmra.mxu0 %vm412_vm1, %v425_v10  ;;  %978 = vmatmul.msk.bf16.vlgmr.msra.gmra.mxu1 %vm412_vm1, %v426_v11 }
  0x29   : > { %979 = vmatmul.msk.bf16.vlgmr.msra.gmra.mxu2 %vm412_vm1, %v427_v12  ;;  %980 = vmatmul.msk.bf16.vlgmr.msra.gmra.mxu3 %vm412_vm1, %v428_v13 }
  0x2a   : > { %658 = vmatpush.bf16.msrb.mxu2 %v649_v60  ;;  %677 = vmatpush.bf16.msrb.mxu3 %v668_v62 }
  0x2b   : > { %620 = vmatpush.bf16.msrb.mxu0 %v611_v1  ;;  %639 = vmatpush.bf16.msrb.mxu1 %v630_v2 }
  0xa5   : > { %v454_v19 = vpop.f32.mrf.mxu0  ;;  %v473_v20 = vpop.f32.mrf.mxu1 }
  0xa6   : > { %v1199_v21 = vsel %vm1193_vm3, -1e+09, %v454_v19  ;;  %v1205_v23 = vsel %vm1193_vm3, -1e+09, %v473_v20 }
  0xa7   : > { %v530_v22 = vsel %vm529_vm4, %v1199_v21, -inf  ;;  %v533_v28 = vsel %vm529_vm4, %v1205_v23, -inf }
  0xa8   : > { %531 = vmax.xlane.f32.xlu1 %v530_v22 }
  0xac   : > { %v492_v24 = vpop.f32.mrf.mxu2  ;;  %v511_v30 = vpop.f32.mrf.mxu3 }
  0xad   : > { %v1209_v25 = vsel %vm1193_vm3, -1e+09, %v492_v24  ;;  %v456_v26 = vpop.f32.mrf.mxu0  ;;  %v475_v27 = vpop.f32.mrf.mxu1  ;;  %v1217_v31 = vsel %vm1193_vm3, -1e+09, %v511_v30 }
  0xae   : > { %v536_v29 = vsel %vm529_vm4, %v1209_v25, -inf  ;;  %v539_v32 = vsel %vm529_vm4, %v1217_v31, -inf }
  0xaf   : > { %537 = vmax.xlane.f32.xlu0 %v536_v29 }
  0xb0   : > { %534 = vmax.xlane.f32.xlu1 %v533_v28 }
  0xb4   : > { %v494_v33 = vpop.f32.mrf.mxu2  ;;  %v513_v34 = vpop.f32.mrf.mxu3 }
  0xb7   : > { %540 = vmax.xlane.f32.xlu0 %v539_v32 }
 0x11b   : > { %v532_v36 = vpop.xlane.xlu1 %531 }
 0x11c   : > { %v542_v37 = vmax.f32 %v525_v35, %v532_v36 }
 0x11e   : > { %736 = vst.msk [vmem:[#allocation2] sm:$0xff] %vm403_vm0, %v542_v37  ;;  %560 = vperm.xlu0 %1023, %v542_v37   ;;  %v546_v38 = vsub.f32 %v525_v35, %v542_v37  ;;  %v686_v35 = vld [vmem:[#allocation3 + $0x18] sm:$0xff] }
 0x120   : > { %v550_v42 = vmul.f32 1.442695, %v546_v38 }
 0x122   : > { %v538_v41 = vpop.xlane.xlu0 %537  ;;  %1025 = vpow2.f32 %v550_v42 }
 0x123   : > { %v544_v43 = vmax.f32 %v527_v39, %v538_v41  ;;  %v535_v44 = vpop.xlane.xlu1 %534 }
 0x124   : > { %v543_v45 = vmax.f32 %v526_v40, %v535_v44 }
 0x125   : > { %v548_v46 = vsub.f32 %v527_v39, %v544_v43  ;;  %738 = vst.msk [vmem:[#allocation2 + $0x10] sm:$0xff] %vm403_vm0, %v544_v43  ;;  %570 = vperm.xlu2 %1022, %v544_v43   ;;  %v702_v39 = vld [vmem:[#allocation4 + $0x10] sm:$0xff] }
 0x126   : > { %737 = vst.msk [vmem:[#allocation2 + $0x8] sm:$0xff] %vm403_vm0, %v543_v45  ;;  %565 = vperm.xlu1 %1024, %v543_v45   ;;  %v547_v48 = vsub.f32 %v526_v40, %v543_v45  ;;  %v683_v40 = vld [vmem:[#allocation3] sm:$0xff] }
 0x127   : > { %v554_v47 = vmul.f32 1.442695, %v548_v46 }
 0x128   : > { %v552_v51 = vmul.f32 1.442695, %v547_v48  ;;  %v1224_v53 = vpop.eup %1025  ;;  %v684_v48 = vld [vmem:[#allocation3 + $0x8] sm:$0xff] }
 0x129   : > { %1027 = vpow2.f32 %v554_v47  ;;  %v687_v42 = vmul.f32 %v1224_v53, %v683_v40  ;;  %v703_v47 = vld [vmem:[#allocation4 + $0x18] sm:$0xff] }
 0x12a   : > { %v541_v50 = vpop.xlane.xlu0 %540  ;;  %1029 = vpow2.f32 %v552_v51 }
 0x12b   : > { %v545_v52 = vmax.f32 %v528_v49, %v541_v50 }
 0x12d   : > { %v549_v54 = vsub.f32 %v528_v49, %v545_v52  ;;  %739 = vst.msk [vmem:[#allocation2 + $0x18] sm:$0xff] %vm403_vm0, %v545_v52  ;;  %575 = vperm.xlu2 %1022, %v545_v52   ;;  %v700_v49 = vld [vmem:[#allocation4] sm:$0xff] }
 0x12e   : > { %706 = vperm.xlu1 %1024, %v1224_v53  }
 0x12f   : > { %v1028_v55 = vpop.eup %1027  ;;  %v556_v56 = vmul.f32 1.442695, %v549_v54 }
 0x130   : > { %716 = vperm.xlu0 %1023, %v1028_v55   ;;  %v1228_v57 = vpop.eup %1029 }
 0x131   : > { %1031 = vpow2.f32 %v556_v56  ;;  %v688_v54 = vmul.f32 %v1228_v57, %v684_v48 }
 0x136   : > { %711 = vperm.xlu1 %1024, %v1228_v57  }
 0x137   : > { %v1032_v58 = vpop.eup %1031 }
 0x138   : > { %v690_v36 = vmul.f32 %v1032_v58, %v686_v35 }
 0x13e   : > { %721 = vperm.xlu1 %1024, %v1032_v58  }
 0x17f   : > { %v571_v3 = vpop.permute.xlu2 %570 }
 0x180   : > { %v580_v4 = vsub.f32 %v1209_v25, %v571_v3 }
 0x182   : > { %v586_v5 = vmul.f32 1.442695, %v580_v4 }
 0x184   : > { %1033 = vpow2.f32 %v586_v5 }
 0x187   : > { %v576_v6 = vpop.permute.xlu2 %575 }
 0x188   : > { %v581_v7 = vsub.f32 %v1217_v31, %v576_v6 }
 0x18a   : > { %v1034_v8 = vpop.eup %1033  ;;  %v588_v9 = vmul.f32 1.442695, %v581_v7 }
 0x18b   : > { %v596_v10 = vsel %vm529_vm4, %v1034_v8, 0.0  ;;  %v604_v11 = vpack.c.bf16 %v1034_v8, %v1034_v8 }
 0x18c   : > { %1035 = vpow2.f32 %v588_v9  ;;  %597 = vadd.xlane.f32.xlu0 %v596_v10 }
 0x18d   : > { %983 = vmatmul.msk.bf16.vlgmr.msrb.gmra.mxu2 %vm529_vm4, %v604_v11 }
 0x190   : > { %v561_v12 = vpop.permute.xlu0 %560 }
 0x191   : > { %v578_v13 = vsub.f32 %v1199_v21, %v561_v12 }
 0x192   : > { %v1036_v14 = vpop.eup %1035 }
 0x193   : > { %v582_v15 = vmul.f32 1.442695, %v578_v13  ;;  %v599_v16 = vsel %vm529_vm4, %v1036_v14, 0.0  ;;  %v605_v17 = vpack.c.bf16 %v1036_v14, %v1036_v14 }
 0x194   : > { %600 = vadd.xlane.f32.xlu1 %v599_v16 }
 0x195   : > { %1037 = vpow2.f32 %v582_v15  ;;  %984 = vmatmul.msk.bf16.vlgmr.msrb.gmra.mxu3 %vm529_vm4, %v605_v17 }
 0x198   : > { %v566_v18 = vpop.permute.xlu1 %565 }
 0x199   : > { %v579_v19 = vsub.f32 %v1205_v23, %v566_v18  ;;  %v685_v23 = vld [vmem:[#allocation3 + $0x10] sm:$0xff] }
 0x19a   : > { %v689_v31 = vmul.f32 %v1028_v55, %v685_v23 }
 0x19b   : > { %v1038_v20 = vpop.eup %1037  ;;  %v584_v22 = vmul.f32 1.442695, %v579_v19 }
 0x19c   : > { %v590_v24 = vsel %vm529_vm4, %v1038_v20, 0.0  ;;  %v602_v25 = vpack.c.bf16 %v1038_v20, %v1038_v20 }
 0x19d   : > { %1039 = vpow2.f32 %v584_v22  ;;  %591 = vadd.xlane.f32.xlu2 %v590_v24 }
 0x19e   : > { %981 = vmatmul.msk.bf16.vlgmr.msrb.gmra.mxu0 %vm529_vm4, %v602_v25 }
 0x1a0   : > { %v707_v28 = vpop.permute.xlu1 %706 }
 0x1a1   : > { %v724_v58 = vmul.f32 %v707_v28, %v700_v49 }
 0x1a2   : > { %v717_v30 = vpop.permute.xlu0 %716 }
 0x1a3   : > { %v1040_v21 = vpop.eup %1039  ;;  %v726_v41 = vmul.f32 %v717_v30, %v702_v39 }
 0x1a4   : > { %v593_v26 = vsel %vm529_vm4, %v1040_v21, 0.0  ;;  %v603_v27 = vpack.c.bf16 %v1040_v21, %v1040_v21 }
 0x1a5   : > { %594 = vadd.xlane.f32.xlu2 %v593_v26 }
 0x1a6   : > { %982 = vmatmul.msk.bf16.vlgmr.msrb.gmra.mxu1 %vm529_vm4, %v603_v27 }
 0x1a8   : > { %v712_v29 = vpop.permute.xlu1 %711 }
 0x1a9   : > { %v725_v63 = vmul.f32 %v712_v29, %v701_v61 }
 0x1b0   : > { %v722_v32 = vpop.permute.xlu1 %721 }
 0x1b1   : > { %v727_v50 = vmul.f32 %v722_v32, %v703_v47 }
 0x1ff   : > { %v598_v33 = vpop.xlane.xlu0 %597 }
 0x200   : > { %v693_v34 = vadd.f32 %v689_v31, %v598_v33 }
 0x202   : > { %698 = vst.msk [vmem:[#allocation3 + $0x10] sm:$0xff] %vm403_vm0, %v693_v34 }
 0x207   : > { %v601_v37 = vpop.xlane.xlu1 %600 }
 0x208   : > { %v694_v38 = vadd.f32 %v690_v36, %v601_v37 }
 0x20a   : > { %699 = vst.msk [vmem:[#allocation3 + $0x18] sm:$0xff] %vm403_vm0, %v694_v38 }
 0x210   : > { %v660_v43 = vpop.f32.mrf.mxu2  ;;  %v592_v44 = vpop.xlane.xlu2 %591 }
 0x211   : > { %v730_v45 = vadd.f32 %v726_v41, %v660_v43  ;;  %v691_v46 = vadd.f32 %v687_v42, %v592_v44 }
 0x213   : > { %734 = vst.msk [vmem:[#allocation4 + $0x10] sm:$0xff] %vm412_vm1, %v730_v45 }
 0x214   : > { %696 = vst.msk [vmem:[#allocation3] sm:$0xff] %vm403_vm0, %v691_v46 }
 0x218   : > { %v662_v51 = vpop.f32.mrf.mxu2  ;;  %v679_v52 = vpop.f32.mrf.mxu3 }
 0x219   : > { %v731_v55 = vadd.f32 %v727_v50, %v679_v52  ;;  %v595_v56 = vpop.xlane.xlu2 %594 }
 0x21a   : > { %v692_v53 = vadd.f32 %v688_v54, %v595_v56 }
 0x21b   : > { %735 = vst.msk [vmem:[#allocation4 + $0x18] sm:$0xff] %vm412_vm1, %v731_v55  ;;  %v622_v59 = vpop.f32.mrf.mxu0 }
 0x21c   : > { %697 = vst.msk [vmem:[#allocation3 + $0x8] sm:$0xff] %vm403_vm0, %v692_v53  ;;  %v728_v60 = vadd.f32 %v724_v58, %v622_v59 }
 0x21e   : > { %732 = vst.msk [vmem:[#allocation4] sm:$0xff] %vm412_vm1, %v728_v60 }
 0x220   : > { %v681_v62 = vpop.f32.mrf.mxu3 }
 0x223   : > { %v624_v0 = vpop.f32.mrf.mxu0  ;;  %v641_v1 = vpop.f32.mrf.mxu1 }
 0x224   : > { %v729_v2 = vadd.f32 %v725_v63, %v641_v1 }
 0x226   : > { %733 = vst.msk [vmem:[#allocation4 + $0x8] sm:$0xff] %vm412_vm1, %v729_v2 }
 0x22b   : > { %v643_v57 = vpop.f32.mrf.mxu1 }
 0x22c PF: > { %v744_v4 = vld [vmem:[#allocation3 + $0x8] sm:$0xff]  ;;  %v1093_v5 = vmov 0   ;;  %v743_v7 = vld [vmem:[#allocation3] sm:$0xff]  ;;  %s1094_s17 = smov 96   ;;  %s1095_s18 = smov 32   ;;  %vm801_vm10 = vcmask 523264  }
 0x22d   : > { %1042 = vset.pattern.permute.xlu1 %v1093_v5  ;;  %1041 = vset.pattern.permute.xlu0 %v1093_v5  ;;  %vm748_vm7 = vcmp.eq.f32.partialorder %v744_v4, 0.0  ;;  %v745_v6 = vld [vmem:[#allocation3 + $0x10] sm:$0xff]  ;;  %vm747_vm8 = vcmp.eq.f32.partialorder %v743_v7, 0.0  ;;  %s1096_s19 = smov 64   ;;  %vm803_vm11 = vcmask 785408  }
 0x22e   : > { %v746_v3 = vld [vmem:[#allocation3 + $0x18] sm:$0xff]  ;;  %v752_v9 = vsel %vm748_vm7, 1.0, %v744_v4  ;;  %vm749_vm9 = vcmp.eq.f32.partialorder %v745_v6, 0.0  ;;  %v751_v10 = vsel %vm747_vm8, 1.0, %v743_v7 }
 0x22f   : > { %vm750_vm6 = vcmp.eq.f32.partialorder %v746_v3, 0.0  ;;  %v753_v11 = vsel %vm749_vm9, 1.0, %v745_v6  ;;  %v759_v27 = vld [vmem:[#allocation4] sm:$0xff] }
 0x230   : > { %v754_v8 = vsel %vm750_vm6, 1.0, %v746_v3  ;;  %v760_v17 = vld [vmem:[#allocation4 + $0x8] sm:$0xff] }
 0x231   : > { %1043 = vrcp.f32 %v754_v8  ;;  %v761_v24 = vld [vmem:[#allocation4 + $0x10] sm:$0xff] }
 0x232   : > { %1045 = vrcp.f32 %v752_v9  ;;  %v762_v16 = vld [vmem:[#allocation4 + $0x18] sm:$0xff] }
 0x233   : > { %1047 = vrcp.f32 %v751_v10 }
 0x234   : > { %1049 = vrcp.f32 %v753_v11 }
 0x237   : > { %v1044_v12 = vpop.eup %1043 }
 0x238   : > { %v1046_v13 = vpop.eup %1045  ;;  %780 = vperm.xlu1 %1042, %v1044_v12  }
 0x239   : > { %770 = vperm.xlu0 %1041, %v1046_v13   ;;  %v1048_v14 = vpop.eup %1047 }
 0x23a   : > { %v1050_v15 = vpop.eup %1049 }
 0x240   : > { %765 = vperm.xlu1 %1042, %v1048_v14  }
 0x241   : > { %775 = vperm.xlu0 %1041, %v1050_v15  }
 0x2aa   : > { %v781_v18 = vpop.permute.xlu1 %780 }
 0x2ab   : > { %v786_v19 = vmul.f32 %v781_v18, %v762_v16  ;;  %v771_v20 = vpop.permute.xlu0 %770 }
 0x2ac   : > { %v784_v22 = vmul.f32 %v771_v20, %v760_v17 }
 0x2ad   : > { %796 = vrot.lane.b32.xlu0 %v786_v19, %s1094_s17 }
 0x2ae   : > { %788 = vrot.lane.b32.xlu2 %v784_v22, %s1095_s18 }
 0x2b2   : > { %v766_v28 = vpop.permute.xlu1 %765 }
 0x2b3   : > { %v776_v25 = vpop.permute.xlu0 %775  ;;  %v783_v29 = vmul.f32 %v766_v28, %v759_v27 }
 0x2b4   : > { %v785_v21 = vmul.f32 %v776_v25, %v761_v24 }
 0x2b6   : > { %792 = vrot.lane.b32.xlu2 %v785_v21, %s1096_s19 }
 0x308   : > { %v789_v26 = vpop.permute.xlu2 %788 }
 0x309   : > { %v800_v23 = vsel %vm412_vm1, %v783_v29, %v789_v26 }
 0x310   : > { %v793_v30 = vpop.permute.xlu2 %792 }
 0x311   : > { %v802_v31 = vsel %vm801_vm10, %v800_v23, %v793_v30 }
 0x31f   : > { %v797_v32 = vpop.permute.xlu0 %796 }
 0x320   : > { %v804_v33 = vsel %vm803_vm11, %v802_v31, %v797_v32 }
 0x321   : > { %805 = vst [vmem:[%s1169_s14] sm:$0xff] %v804_v33 }
 0x322 PF: > { %s23_s24 = sadd.s32 1, %s1087_s24   ;;  %s1276_s22 = smov %s1083_s23 }
 0x323   : > { %p20_p6 = scmp.ge.s32.totalorder %s23_s24, 4   ;;  %s1277_s23 = smov %s1279_s0 }
 0x325   :  { %22 = sbr.rel (!%p20_p6) target bundleno = 8 (0x8), region = 87 }

</bundles_post_ra>
